<compile_context>
chip_gen: v5e
topology: v5e:2x2
jax: 0.10.0
libtpu: 0.0.40
codegen_flags: <defaults>
</compile_context>

<pallas_src>
import functools

import jax
import jax.numpy as jnp
from jax.experimental import pallas as pl
from jax.experimental.pallas import tpu as pltpu

_LANE = 128
_SUBLANE = 8


def _round_up(x, m):
    return (x + m - 1) // m * m


def _choose_m_tile(m, target):
    """Row tile for the [M, K_pad] patch matrix.

    Whole image if it fits the target (a full-dim block is always legal),
    otherwise a sublane-aligned streaming tile with M zero-padded to a
    multiple of it.
    """
    target = max(_SUBLANE, _round_up(target, _SUBLANE))
    if m <= target:
        return m, m
    m_pad = _round_up(m, target)
    return target, m_pad


def _conv_pool_kernel(patch_ref, wc_ref, bc_ref, pooled_ref, *,
                      n_pad_rows, inv_hw):
    # patch_ref : [tile_m, K_pad]  bf16  im2col patch rows of this tile
    # wc_ref    : [K_pad, Cout_p]  bf16  im2col conv weight (zero padded)
    # bc_ref    : [1, Cout_p]      f32   conv bias (zero padded)
    # pooled_ref: [1, Cout_p]      f32   output block, resident across m axis
    m = pl.program_id(1)

    # One MXU matmul per tile: bf16 in, f32 accumulation; bias/ReLU in f32.
    acc = jnp.dot(patch_ref[...], wc_ref[...],
                  preferred_element_type=jnp.float32)          # [tile_m, Cout_p]
    acc = jnp.maximum(acc + bc_ref[...], 0.0)
    tile_sum = jnp.sum(acc, axis=0, keepdims=True)             # [1, Cout_p]

    @pl.when(m == 0)
    def _init():
        pooled_ref[...] = jnp.zeros_like(pooled_ref)

    pooled_ref[...] += tile_sum

    @pl.when(m == pl.num_programs(1) - 1)
    def _finish():
        pooled = pooled_ref[...]
        if n_pad_rows:
            # Zero-padded patch rows contribute relu(bias) each; remove them.
            pooled = pooled - float(n_pad_rows) * jnp.maximum(bc_ref[...], 0.0)
        pooled_ref[...] = pooled * inv_hw                      # global avg pool


def _head_kernel(feat_ref, wh_ref, bh_ref, out_ref):
    # Batched head Linear over all N rows at once, f32 for parity.
    out_ref[...] = (jnp.dot(feat_ref[...], wh_ref[...],
                            preferred_element_type=jnp.float32) + bh_ref[...])


def _vmem_limit_bytes(tile_m, k_pad, cout_p):
    patch_blk = tile_m * k_pad * 2            # bf16, double-buffered
    wc_blk = k_pad * cout_p * 2               # bf16
    bc_blk = cout_p * 4
    out_blk = cout_p * 4
    acc = tile_m * cout_p * 4                 # f32 matmul result
    need = 2 * (patch_blk + wc_blk + bc_blk + out_blk) + 2 * acc
    need += 8 << 20                           # compiler scratch headroom
    # 128 MiB physical on v5e/v6e, 64 MiB on v7x -> safe 48 MiB ceiling.
    return int(min(max(need, 16 << 20), 48 << 20))


def image_encoder_forward(x_nchw, conv_w, conv_b, head_w, head_b, *,
                          m_tile_target=2048):
    """x_nchw: [N, Cin, H, W] f32; conv_w: [Cout, Cin, 3, 3]; head_w: [Cout, Dout]."""
    N, Cin, H, W = x_nchw.shape
    Cout, Dout = head_w.shape
    assert conv_w.shape == (Cout, Cin, 3, 3)

    # Lane padding.  v6e/v7x MXU tiles are 256 wide: use a 256-multiple conv
    # output dimension once Cout exceeds one lane group.
    cout_p = _round_up(Cout, 256) if Cout > _LANE else _LANE
    dout_p = _round_up(Dout, _LANE)
    k_used = 9 * Cin
    k_pad = _round_up(k_used, _LANE)

    m = H * W
    tile_m, m_pad = _choose_m_tile(m, m_tile_target)
    num_m = m_pad // tile_m
    n_pad_rows = m_pad - m
    inv_hw = 1.0 / float(m)

    # ---- wrapper-side im2col: bf16 patches [N, M_pad, K_pad] -------------
    x_nhwc = jnp.transpose(x_nchw.astype(jnp.float32), (0, 2, 3, 1))
    xp = jnp.pad(x_nhwc, ((0, 0), (1, 1), (1, 1), (0, 0)))    # conv padding=1
    taps = [xp[:, kh:kh + H, kw:kw + W, :]
            for kh in range(3) for kw in range(3)]
    patches = jnp.concatenate(taps, axis=-1).reshape(N, m, k_used)
    patches = jnp.pad(patches, ((0, 0), (0, m_pad - m), (0, k_pad - k_used)))
    patches = patches.astype(jnp.bfloat16)

    # Conv weight [Cout,Cin,3,3] -> im2col [(kh,kw,cin), Cout] -> pad -> bf16.
    wc = jnp.transpose(conv_w.astype(jnp.float32),
                       (2, 3, 1, 0)).reshape(k_used, Cout)
    wc = jnp.pad(wc, ((0, k_pad - k_used), (0, cout_p - Cout))).astype(jnp.bfloat16)
    bc = jnp.pad(conv_b.astype(jnp.float32), (0, cout_p - Cout)).reshape(1, cout_p)

    conv_kernel = functools.partial(_conv_pool_kernel,
                                    n_pad_rows=n_pad_rows, inv_hw=inv_hw)

    flops = 2 * N * m_pad * k_pad * cout_p
    bytes_accessed = (patches.size * 2 + wc.size * 2 + bc.size * 4 +
                      N * cout_p * 4)
    cost = pl.CostEstimate(flops=flops, transcendentals=0,
                           bytes_accessed=bytes_accessed)

    pooled = pl.pallas_call(
        conv_kernel,
        out_shape=jax.ShapeDtypeStruct((N, 1, cout_p), jnp.float32),
        grid_spec=pltpu.PrefetchScalarGridSpec(
            num_scalar_prefetch=0,
            grid=(N, num_m),
            in_specs=[
                pl.BlockSpec((None, tile_m, k_pad), lambda n, r: (n, r, 0)),
                pl.BlockSpec((k_pad, cout_p), lambda n, r: (0, 0)),
                pl.BlockSpec((1, cout_p), lambda n, r: (0, 0)),
            ],
            out_specs=pl.BlockSpec((None, 1, cout_p), lambda n, r: (n, 0, 0)),
        ),
        compiler_params=pltpu.CompilerParams(
            # TODO(synk): with a single batch element per chip on v7x the
            # second TensorCore idles; split the m axis across cores instead.
            dimension_semantics=("parallel", "arbitrary"),
            vmem_limit_bytes=_vmem_limit_bytes(tile_m, k_pad, cout_p),
        ),
        cost_estimate=cost,
    )(patches, wc, bc)

    feat = pooled.reshape(N, cout_p)                           # f32 pooled means

    # ---- head Linear: one batched matmul over all N, f32 for parity ------
    wh = jnp.pad(head_w.astype(jnp.float32),
                 ((0, cout_p - Cout), (0, dout_p - Dout)))
    bh = jnp.pad(head_b.astype(jnp.float32), (0, dout_p - Dout)).reshape(1, dout_p)

    out = pl.pallas_call(
        _head_kernel,
        out_shape=jax.ShapeDtypeStruct((N, dout_p), jnp.float32),
    )(feat, wh, bh)

    return out[:, :Dout]


def reference_forward(x_nchw, conv_w, conv_b, head_w, head_b):
    """Pure-JAX f32 reference mirroring the PyTorch semantics."""
    y = jax.lax.conv_general_dilated(
        x_nchw, conv_w, window_strides=(1, 1), padding=((1, 1), (1, 1)),
        dimension_numbers=("NCHW", "OIHW", "NCHW"))
    y = y + conv_b[None, :, None, None]
    y = jnp.maximum(y, 0.0)
    feat = y.mean(axis=(2, 3))                                 # global avg pool
    return feat @ head_w + head_b[None, :]


if __name__ == "__main__":
    key = jax.random.PRNGKey(0)
    k1, k2, k3, k4, k5 = jax.random.split(key, 5)

    N, Cin, H, W = 2, 4, 16, 16
    Cout, Dout = 32, 32

    x = jax.random.normal(k1, (N, Cin, H, W), dtype=jnp.float32)
    conv_w = 0.1 * jax.random.normal(k2, (Cout, Cin, 3, 3), dtype=jnp.float32)
    conv_b = 0.1 * jax.random.normal(k3, (Cout,), dtype=jnp.float32)
    head_w = 0.1 * jax.random.normal(k4, (Cout, Dout), dtype=jnp.float32)
    head_b = 0.1 * jax.random.normal(k5, (Dout,), dtype=jnp.float32)

    ref = reference_forward(x, conv_w, conv_b, head_w, head_b)

    # Default path: whole image = one fat matmul tile per batch element.
    out = image_encoder_forward(x, conv_w, conv_b, head_w, head_b)
    out = jax.block_until_ready(out)
    assert out.shape == (N, Dout)
    # bf16 conv operands (f32 accumulation) => slightly loose tolerance.
    assert jnp.allclose(out, ref, atol=3e-2, rtol=3e-2), "mismatch (single tile)"

    # Multi-tile path: exercises the resident pooled-sum accumulator
    # (pl.when init / finalize across the m axis).
    out2 = image_encoder_forward(x, conv_w, conv_b, head_w, head_b,
                                 m_tile_target=128)
    out2 = jax.block_until_ready(out2)
    assert jnp.allclose(out2, ref, atol=3e-2, rtol=3e-2), "mismatch (multi tile)"

    # Ragged spatial size: exercises the zero-padded-row bias correction.
    H3, W3 = 10, 10
    x3 = jax.random.normal(k1, (N, Cin, H3, W3), dtype=jnp.float32)
    ref3 = reference_forward(x3, conv_w, conv_b, head_w, head_b)
    out3 = image_encoder_forward(x3, conv_w, conv_b, head_w, head_b,
                                 m_tile_target=64)
    out3 = jax.block_until_ready(out3)
    assert jnp.allclose(out3, ref3, atol=3e-2, rtol=3e-2), "mismatch (padded rows)"

    print("KERNEL_OK")
</pallas_src>

<mosaic_0001>
module attributes {stable_mosaic.version = 11 : i64} {
  func.func @_conv_pool_kernel(%arg0: i32, %arg1: i32, %arg2: memref<1x256x128xbf16, #tpu.memory_space<vmem>>, %arg3: memref<128x128xbf16, #tpu.memory_space<vmem>>, %arg4: memref<1x128xf32, #tpu.memory_space<vmem>>, %arg5: memref<1x1x128xf32, #tpu.memory_space<vmem>>) attributes {dimension_semantics = [#tpu.dimension_semantics<parallel>, #tpu.dimension_semantics<arbitrary>], iteration_bounds = array<i64: 2, 1>, scalar_prefetch = 0 : i64, scratch_operands = 0 : i64, tpu.core_type = #tpu.core_type<tc>, window_params = [{transform_indices = @transform_0, window_bounds = array<i64: 1, 256, 128>}, {pipeline_mode = #tpu.pipeline_mode<synchronous>, transform_indices = @transform_1, window_bounds = array<i64: 128, 128>}, {pipeline_mode = #tpu.pipeline_mode<synchronous>, transform_indices = @transform_2, window_bounds = array<i64: 1, 128>}, {transform_indices = @transform_3, window_bounds = array<i64: 1, 1, 128>}]} {
    %c0 = arith.constant 0 : index
    %c0_0 = arith.constant 0 : index
    %c0_1 = arith.constant 0 : index
    %0 = vector.load %arg2[%c0, %c0_0, %c0_1] : memref<1x256x128xbf16, #tpu.memory_space<vmem>>, vector<1x256x128xbf16>
    %1 = vector.shape_cast %0 : vector<1x256x128xbf16> to vector<256x128xbf16>
    %c0_2 = arith.constant 0 : index
    %c0_3 = arith.constant 0 : index
    %2 = vector.load %arg3[%c0_2, %c0_3] : memref<128x128xbf16, #tpu.memory_space<vmem>>, vector<128x128xbf16>
    %cst = arith.constant dense<0.000000e+00> : vector<256x128xf32>
    %3 = tpu.matmul %1, %2, %cst {dimension_numbers = #tpu.dot_dimension_numbers<[1], [0], [0], [1], [0, 0, 1, 1], [], []>} : vector<256x128xbf16>, vector<128x128xbf16>, vector<256x128xf32> -> vector<256x128xf32>
    %c0_4 = arith.constant 0 : index
    %c0_5 = arith.constant 0 : index
    %4 = vector.load %arg4[%c0_4, %c0_5] : memref<1x128xf32, #tpu.memory_space<vmem>>, vector<1x128xf32>
    %5 = vector.broadcast %4 : vector<1x128xf32> to vector<256x128xf32>
    %6 = arith.addf %3, %5 : vector<256x128xf32>
    %cst_6 = arith.constant 0.000000e+00 : f32
    %7 = vector.broadcast %cst_6 : f32 to vector<256x128xf32>
    %8 = arith.maximumf %6, %7 : vector<256x128xf32>
    %cst_7 = arith.constant dense<0.000000e+00> : vector<128xf32>
    %9 = vector.multi_reduction <add>, %8, %cst_7 [0] : vector<256x128xf32> to vector<128xf32>
    %10 = vector.shape_cast %9 : vector<128xf32> to vector<1x128xf32>
    %c0_i32 = arith.constant 0 : i32
    %11 = arith.cmpi eq, %arg1, %c0_i32 : i32
    %12 = arith.extui %11 : i1 to i32
    %c0_i32_8 = arith.constant 0 : i32
    %13 = arith.cmpi ne, %12, %c0_i32_8 : i32
    scf.if %13 {
      %cst_17 = arith.constant 0.000000e+00 : f32
      %23 = vector.broadcast %cst_17 : f32 to vector<1x128xf32>
      %c0_18 = arith.constant 0 : index
      %c0_19 = arith.constant 0 : index
      %c0_20 = arith.constant 0 : index
      %24 = vector.load %arg5[%c0_18, %c0_19, %c0_20] : memref<1x1x128xf32, #tpu.memory_space<vmem>>, vector<1x1x128xf32>
      %25 = vector.shape_cast %24 : vector<1x1x128xf32> to vector<1x128xf32>
      %26 = vector.shape_cast %23 : vector<1x128xf32> to vector<1x1x128xf32>
      tpu.vector_store %arg5[%c0_18, %c0_19, %c0_20], %26 {strides = array<i32>} : memref<1x1x128xf32, #tpu.memory_space<vmem>>, vector<1x1x128xf32>,
    } else {
    }
    %c0_9 = arith.constant 0 : index
    %c0_10 = arith.constant 0 : index
    %c0_11 = arith.constant 0 : index
    %14 = vector.load %arg5[%c0_9, %c0_10, %c0_11] : memref<1x1x128xf32, #tpu.memory_space<vmem>>, vector<1x1x128xf32>
    %15 = vector.shape_cast %14 : vector<1x1x128xf32> to vector<1x128xf32>
    %16 = arith.addf %15, %10 : vector<1x128xf32>
    %c0_12 = arith.constant 0 : index
    %c0_13 = arith.constant 0 : index
    %c0_14 = arith.constant 0 : index
    %17 = vector.load %arg5[%c0_12, %c0_13, %c0_14] : memref<1x1x128xf32, #tpu.memory_space<vmem>>, vector<1x1x128xf32>
    %18 = vector.shape_cast %17 : vector<1x1x128xf32> to vector<1x128xf32>
    %19 = vector.shape_cast %16 : vector<1x128xf32> to vector<1x1x128xf32>
    tpu.vector_store %arg5[%c0_12, %c0_13, %c0_14], %19 {strides = array<i32>} : memref<1x1x128xf32, #tpu.memory_space<vmem>>, vector<1x1x128xf32>,
    %c0_i32_15 = arith.constant 0 : i32
    %20 = arith.cmpi eq, %arg1, %c0_i32_15 : i32
    %21 = arith.extui %20 : i1 to i32
    %c0_i32_16 = arith.constant 0 : i32
    %22 = arith.cmpi ne, %21, %c0_i32_16 : i32
    scf.if %22 {
      %c0_17 = arith.constant 0 : index
      %c0_18 = arith.constant 0 : index
      %c0_19 = arith.constant 0 : index
      %23 = vector.load %arg5[%c0_17, %c0_18, %c0_19] : memref<1x1x128xf32, #tpu.memory_space<vmem>>, vector<1x1x128xf32>
      %24 = vector.shape_cast %23 : vector<1x1x128xf32> to vector<1x128xf32>
      %cst_20 = arith.constant 3.906250e-03 : f32
      %25 = vector.broadcast %cst_20 : f32 to vector<1x128xf32>
      %26 = arith.mulf %24, %25 : vector<1x128xf32>
      %c0_21 = arith.constant 0 : index
      %c0_22 = arith.constant 0 : index
      %c0_23 = arith.constant 0 : index
      %27 = vector.load %arg5[%c0_21, %c0_22, %c0_23] : memref<1x1x128xf32, #tpu.memory_space<vmem>>, vector<1x1x128xf32>
      %28 = vector.shape_cast %27 : vector<1x1x128xf32> to vector<1x128xf32>
      %29 = vector.shape_cast %26 : vector<1x128xf32> to vector<1x1x128xf32>
      tpu.vector_store %arg5[%c0_21, %c0_22, %c0_23], %29 {strides = array<i32>} : memref<1x1x128xf32, #tpu.memory_space<vmem>>, vector<1x1x128xf32>,
    } else {
    }
    return
  }
  func.func @transform_0(%arg0: i32, %arg1: i32) -> (i32, i32, i32) {
    %c0_i32 = arith.constant 0 : i32
    %c0_i32_0 = arith.constant 0 : i32
    return %arg0, %arg1, %c0_i32 : i32, i32, i32
  }
  func.func @transform_1(%arg0: i32, %arg1: i32) -> (i32, i32) {
    %c0_i32 = arith.constant 0 : i32
    %c0_i32_0 = arith.constant 0 : i32
    %c0_i32_1 = arith.constant 0 : i32
    return %c0_i32, %c0_i32_0 : i32, i32
  }
  func.func @transform_2(%arg0: i32, %arg1: i32) -> (i32, i32) {
    %c0_i32 = arith.constant 0 : i32
    %c0_i32_0 = arith.constant 0 : i32
    %c0_i32_1 = arith.constant 0 : i32
    return %c0_i32, %c0_i32_0 : i32, i32
  }
  func.func @transform_3(%arg0: i32, %arg1: i32) -> (i32, i32, i32) {
    %c0_i32 = arith.constant 0 : i32
    %c0_i32_0 = arith.constant 0 : i32
    %c0_i32_1 = arith.constant 0 : i32
    return %arg0, %c0_i32, %c0_i32_0 : i32, i32, i32
  }
}

</mosaic_0001>

<bundles_post_ra>
// kernel: tpu_custom_call.1
= control target key start
LH: loop header
LB: loop body
LE: loop exit
PB: predicated region body
PF: predicated region fallthrough
CT: control target
= control target key end

     0   :  { %s1339_s0 = inlined_call_operand.hbm [shape: bf16[2,256,128], index: 0, kind: input, shape index: {}]   ;;  %s1340_s1 = inlined_call_operand.hbm [shape: bf16[128,128], index: 1, kind: input, shape index: {}]   ;;  %s1341_s2 = inlined_call_operand.vmem [shape: f32[1,128], index: 2, kind: input, shape index: {}]   ;;  %s1342_s3 = inlined_call_operand.hbm [shape: f32[2,1,128], index: 3, kind: output, shape index: {}]  }
   0x1   :  { %1344 = sst [smem:[#allocation11_spill]] %s1340_s1 }
   0x2   :  { %8 = vsyncpa [#allocation3], 0 }
   0x3   :  { %10 = vsyncpa [#allocation3 + $0x1], 0 }
   0x4   :  { %11 = vsyncpa [#allocation6], 0 }
   0x5   :  { %12 = vsyncpa [#allocation4], 0 }
   0x6   :  { %14 = vsyncpa [#allocation4 + $0x1], 0  ;;  %s1099_s12 = smov 0   ;;  %s1101_s13 = smov 0  }
   0x7   :  { %s1103_s14 = smov 0   ;;  %s1105_s15 = smov 0  }
   0x8   :  { %s1107_s16 = smov 0   ;;  %s1109_s17 = smov 0  }
   0x9 LB: > { %s692_s18 = sadd.s32 4294967295, %s1073_s17   ;;  %s693_s19 = sadd.s32 4294967294, %s1073_s17   ;;  %s1073_s17 = sphi %s1109_s17, %s20_s17   ;;  %s1069_s16 = sphi %s1107_s16, %s1358_s16   ;;  %s1065_s15 = sphi %s1105_s15, %s1357_s15   ;;  %s1061_s14 = sphi %s1103_s14, %s1356_s14   ;;  %s1057_s13 = sphi %s1101_s13, %s1355_s13   ;;  %s1053_s12 = sphi %s1099_s12, %s1354_s12  }
   0xa   : > { %p54_p0 = scmp.ne.s32.totalorder %s1057_s13, %s1053_s12  ;;  %p1133_p1 = scmp.eq.s32.totalorder %s692_s18, 0 }
   0xb   : > { %p1137_p2 = scmp.eq.s32.totalorder %s692_s18, 1  ;;  %p126_p3 = scmp.eq.s32.totalorder %s693_s19, 1 }
   0xc   : > { %p1143_p4 = por %p1133_p1, %p54_p0  ;;  %p694_p5 = scmp.ge.s32.totalorder %s1073_s17, 1 }
   0xd   : > { %p1148_p6 = por %p126_p3, %p54_p0  ;;  %p133_p7 = scmp.lt.s32.totalorder %s1073_s17, 3 }
   0xe   : > { %s1349_s1 = sld [smem:[#allocation11_spill]]  ;;  %s1075_s28 = smov [#allocation5]  }
   0xf   : > { %p1156_p8 = pnand %p694_p5, %p133_p7  ;;  %s146_s29 = sshll.u32 %s1075_s28, 4  ;;  %s147_s29 = int_to_ptr.vmem [resolvable:$true] %s146_s29 }
  0x10   : > { %p696_p11 = scmp.ge.s32.totalorder %s1073_s17, 2  ;;  %s1343_s30 = smov 64  }
  0x11   : > { %p858_p9 = pneg %p1156_p8  ;;  %s1077_s4 = smov 4  }
  0x12   : > { %s32_s5 = sadd.s32 1, %s1069_s16  ;;  %s41_s6 = sadd.s32 1, %s1061_s14 }
  0x13   : > { %p859_p10 = pnand %p858_p9, %p1133_p1  ;;  %p34_p12 = scmp.ge.s32.totalorder %s32_s5, 2 }
  0x14   : > { %s144_s26 = sshll.u32 %s1349_s1, 4  ;;  %p48_p13 = scmp.ne.s32.totalorder %s1061_s14, %s1057_s13  ;;  %s145_s26 = int_to_ptr.hbm [resolvable:$true] %s144_s26 }
  0x15   : > { %861 = dma.hbm_to_vmem [thread:$0]  (!%p859_p10), %s145_s26, 1024, %s147_s29, [#allocation6], %s1343_s30, %s1343_s30, %s1077_s4  }
  0x16   : > { %p49_p0 = scmp.eq.s32.totalorder %s1073_s17, 0  ;;  %s1360_s5 = smov (%p34_p12, %s32_s5), 0 }
  0x17   : > { %p1181_p5 = por %p1137_p2, %p48_p13  ;;  %s36_s9 = ssub.s32 %s1069_s16, %s1360_s5 }
  0x18   : > { %p1175_p3 = por %p49_p0, %p48_p13  ;;  %p871_p7 = scmp.lt.s32.totalorder %s1073_s17, 2 }
  0x19   : > { %p39_p9 = scmp.eq.s32.totalorder %s36_s9, 0  ;;  %s163_s10 = sand.u32 1, %s1061_s14  }
  0x1a   : > { %s697_s11 = sshll.u32 %s163_s10, 7  ;;  %s801_s19 = sshll.u32 %s1069_s16, 7 }
  0x1b   : > { %s1190_s18 = scalar_select %p39_p9, %s1061_s14, %s41_s6  }
  0x1c   : > { %s174_s26 = scalar_lea.hbm %s1339_s0, %s801_s19  ;;  %s167_s28 = scalar_lea.vmem [#allocation2], %s697_s11 }
  0x1d   : > { %s177_s29 = sshll.u32 %s167_s28, 4  ;;  %s175_s21 = sshll.u32 %s174_s26, 4  ;;  %s178_s29 = int_to_ptr.vmem [resolvable:$true] %s177_s29  ;;  %s176_s21 = int_to_ptr.hbm [resolvable:$true] %s175_s21 }
  0x1e   : > { %p863_p2 = pnand %p871_p7, %p1175_p3  ;;  %s164_s30 = scalar_lea.sflag [#allocation3], %s163_s10 }
  0x1f   : > { %s1353_s1 = smov 64   ;;  %189 = sbr.rel (%p1156_p8) target bundleno = 334 (0x14e), region = 32 }
  0x20   : > { %865 = dma.hbm_to_vmem [thread:$0]  (!%p863_p2), %s176_s21, 2048, %s178_s29, %s164_s30, %s1353_s1, %s1353_s1, %s1077_s4  }
  0x21   : > { %s1204_s6 = sand.u32 (!%p1156_p8), 1, %s1057_s13  }
  0x22   : > { %s701_s9 = sshll.u32 (!%p1156_p8), %s1204_s6, 7  ;;  %s192_s11 = scalar_lea.sflag (!%p1156_p8), [#allocation3], %s1204_s6 }
  0x23   : > { %s1208_s19 = scalar_lea.vmem (!%p1156_p8), [#allocation2], %s701_s9 }
  0x24   : > { %1040 = dma.done.wait (%p1143_p4), %s192_s11, 2048  }
  0x25   : > { %1042 = vsyncadd (%p1143_p4), %s192_s11, 4294965248 }
  0x26   : > { %1044 = dma.done.wait (%p1133_p1), [#allocation6], 1024  }
  0x27   : > { %1046 = vsyncadd (%p1133_p1), [#allocation6], 4294966272  ;;  %v825_v0 = vld [vmem:[#allocation5 + $0x38] sm:$0xff]  ;;  %v824_v1 = vld [vmem:[#allocation5 + $0x30] sm:$0xff]  ;;  %s1279_s22 = scalar_lea.vmem [#allocation7], %s1204_s6  ;;  %s601_s4 = scalar_lea.hbm %s1342_s3, %s1065_s15 }
  0x28   : > { %420 = vmatpush.bf16.msra.mxu0 %v825_v0  ;;  %826 = vmatpush.bf16.msra.mxu1 %v825_v0  ;;  %v823_v2 = vld [vmem:[#allocation5 + $0x28] sm:$0xff]  ;;  %v822_v3 = vld [vmem:[#allocation5 + $0x20] sm:$0xff]  ;;  %v821_v4 = vld [vmem:[#allocation5 + $0x18] sm:$0xff]  ;;  %s603_s7 = sshll.u32 %s1279_s22, 4  ;;  %s605_s10 = sshll.u32 %s601_s4, 4  ;;  %s604_s7 = int_to_ptr.vmem [resolvable:$true] %s603_s7  ;;  %s606_s10 = int_to_ptr.hbm [resolvable:$true] %s605_s10 }
  0x29   : > { %827 = vmatpush.bf16.msra.mxu2 %v825_v0  ;;  %828 = vmatpush.bf16.msra.mxu3 %v825_v0  ;;  %v820_v5 = vld [vmem:[#allocation5 + $0x10] sm:$0xff]  ;;  %v819_v6 = vld [vmem:[#allocation5 + $0x8] sm:$0xff]  ;;  %v818_v7 = vld [vmem:[#allocation5] sm:$0xff]  ;;  %s593_s24 = scalar_lea.sflag [#allocation4], %s1204_s6  ;;  %s1001_s25 = sshra.s32 %s606_s10, 4  ;;  %s1002_s25 = int_to_ptr.hbm [resolvable:$true] %s1001_s25 }
  0x2a   : > { %v802_v8 = vld [vmem:[%s1208_s19] sm:$0xff]  ;;  %v803_v12 = vld [vmem:[%s1208_s19 + $0x8] sm:$0xff]  ;;  %v804_v16 = vld [vmem:[%s1208_s19 + $0x10] sm:$0xff]  ;;  %s1003_s26 = scalar_lea.hbm %s1002_s25, 1  ;;  %s1007_s21 = scalar_lea.hbm %s1342_s3, 2 }
  0x2b   : > { %v806_v9 = vld [vmem:[%s1208_s19 + $0x20] sm:$0xff]  ;;  %v807_v13 = vld [vmem:[%s1208_s19 + $0x28] sm:$0xff]  ;;  %v808_v17 = vld [vmem:[%s1208_s19 + $0x30] sm:$0xff]  ;;  %p1004_p1 = scmp.ne.s32.totalorder %s1002_s25, %s1003_s26  ;;  %p1008_p10 = scmp.lt.s32.totalorder %s1002_s25, %s1342_s3 }
  0x2c   : > { %421 = vmatpush.bf16.msra.mxu0 %v824_v1  ;;  %829 = vmatpush.bf16.msra.mxu1 %v824_v1  ;;  %v810_v10 = vld [vmem:[%s1208_s19 + $0x40] sm:$0xff]  ;;  %v811_v14 = vld [vmem:[%s1208_s19 + $0x48] sm:$0xff]  ;;  %v812_v18 = vld [vmem:[%s1208_s19 + $0x50] sm:$0xff]  ;;  %p1009_p12 = scmp.lt.s32.totalorder %s1007_s21, %s1003_s26 }
  0x2d   : > { %830 = vmatpush.bf16.msra.mxu2 %v824_v1  ;;  %831 = vmatpush.bf16.msra.mxu3 %v824_v1  ;;  %v814_v11 = vld [vmem:[%s1208_s19 + $0x60] sm:$0xff]  ;;  %v815_v15 = vld [vmem:[%s1208_s19 + $0x68] sm:$0xff]  ;;  %v816_v19 = vld [vmem:[%s1208_s19 + $0x70] sm:$0xff]  ;;  %p1005_p4 = pnand %p1004_p1, %p1181_p5 }
  0x2e   : > { %v805_v20 = vld [vmem:[%s1208_s19 + $0x18] sm:$0xff]  ;;  %v1245_v38 = vld [vmem:[%s1341_s2] ss:$0 sm:$0xff]  ;;  %p1010_p13 = por %p1009_p12, %p1008_p10 }
  0x2f   : > { %v809_v21 = vld [vmem:[%s1208_s19 + $0x38] sm:$0xff]  ;;  %p1006_p8 = pneg %p1005_p4 }
  0x30   : > { %422 = vmatpush.bf16.msra.mxu0 %v823_v2  ;;  %832 = vmatpush.bf16.msra.mxu1 %v823_v2  ;;  %v813_v22 = vld [vmem:[%s1208_s19 + $0x58] sm:$0xff] }
  0x31   : > { %833 = vmatpush.bf16.msra.mxu2 %v823_v2  ;;  %834 = vmatpush.bf16.msra.mxu3 %v823_v2  ;;  %v817_v23 = vld [vmem:[%s1208_s19 + $0x78] sm:$0xff]  ;;  %p1011_p0 = pnand %p1010_p13, %p1006_p8 }
  0x34   : > { %423 = vmatpush.bf16.msra.mxu0 %v822_v3  ;;  %835 = vmatpush.bf16.msra.mxu1 %v822_v3 }
  0x35   : > { %836 = vmatpush.bf16.msra.mxu2 %v822_v3  ;;  %837 = vmatpush.bf16.msra.mxu3 %v822_v3 }
  0x38   : > { %424 = vmatpush.bf16.msra.mxu0 %v821_v4  ;;  %838 = vmatpush.bf16.msra.mxu1 %v821_v4 }
  0x39   : > { %839 = vmatpush.bf16.msra.mxu2 %v821_v4  ;;  %840 = vmatpush.bf16.msra.mxu3 %v821_v4 }
  0x3c   : > { %425 = vmatpush.bf16.msra.mxu0 %v820_v5  ;;  %841 = vmatpush.bf16.msra.mxu1 %v820_v5 }
  0x3d   : > { %842 = vmatpush.bf16.msra.mxu2 %v820_v5  ;;  %843 = vmatpush.bf16.msra.mxu3 %v820_v5 }
  0x40   : > { %426 = vmatpush.bf16.msra.mxu0 %v819_v6  ;;  %844 = vmatpush.bf16.msra.mxu1 %v819_v6 }
  0x41   : > { %845 = vmatpush.bf16.msra.mxu2 %v819_v6  ;;  %846 = vmatpush.bf16.msra.mxu3 %v819_v6 }
  0x44   : > { %427 = vmatpush.bf16.msra.mxu0 %v818_v7  ;;  %847 = vmatpush.bf16.msra.mxu1 %v818_v7 }
  0x45   : > { %848 = vmatpush.bf16.msra.mxu2 %v818_v7  ;;  %849 = vmatpush.bf16.msra.mxu3 %v818_v7 }
  0x47   : > { %428 = vmatmul.bf16.vlgmr.msra.gmra.mxu0 %v802_v8  ;;  %448 = vmatmul.bf16.vlgmr.msra.gmra.mxu1 %v806_v9 }
  0x48   : > { %468 = vmatmul.bf16.vlgmr.msra.gmra.mxu2 %v810_v10  ;;  %488 = vmatmul.bf16.vlgmr.msra.gmra.mxu3 %v814_v11 }
  0x57   : > { %433 = vmatmul.bf16.gmra.mxu0 %v803_v12  ;;  %453 = vmatmul.bf16.gmra.mxu1 %v807_v13 }
  0x58   : > { %473 = vmatmul.bf16.gmra.mxu2 %v811_v14  ;;  %493 = vmatmul.bf16.gmra.mxu3 %v815_v15 }
  0x67   : > { %438 = vmatmul.bf16.gmra.mxu0 %v804_v16  ;;  %458 = vmatmul.bf16.gmra.mxu1 %v808_v17 }
  0x68   : > { %478 = vmatmul.bf16.gmra.mxu2 %v812_v18  ;;  %498 = vmatmul.bf16.gmra.mxu3 %v816_v19 }
  0x77   : > { %443 = vmatmul.bf16.gmra.mxu0 %v805_v20  ;;  %463 = vmatmul.bf16.gmra.mxu1 %v809_v21 }
  0x78   : > { %483 = vmatmul.bf16.gmra.mxu2 %v813_v22  ;;  %503 = vmatmul.bf16.gmra.mxu3 %v817_v23 }
  0xc4   : > { %v429_v24 = vpop.f32.mrf.mxu0  ;;  %v449_v25 = vpop.f32.mrf.mxu1 }
  0xc5   : > { %v430_v42 = vadd.f32 %v1245_v38, %v429_v24  ;;  %v450_v1 = vadd.f32 %v1245_v38, %v449_v25 }
  0xc7   : > { %v509_v47 = vmax.f32 %v430_v42, 0.0  ;;  %v517_v9 = vmax.f32 %v450_v1, 0.0 }
  0xcb   : > { %v1234_v28 = vpop.f32.mrf.mxu2  ;;  %v1238_v34 = vpop.f32.mrf.mxu3 }
  0xcc   : > { %v431_v26 = vpop.f32.mrf.mxu0  ;;  %v451_v27 = vpop.f32.mrf.mxu1 }
  0xcd   : > { %v432_v41 = vadd.f32 %v1245_v38, %v431_v26  ;;  %v452_v5 = vadd.f32 %v1245_v38, %v451_v27 }
  0xcf   : > { %v510_v45 = vmax.f32 %v432_v41, 0.0  ;;  %v518_v12 = vmax.f32 %v452_v5, 0.0 }
  0xd1   : > { %v541_v52 = vadd.f32 %v510_v45, %v509_v47 }
  0xd3   : > { %v1236_v32 = vpop.f32.mrf.mxu2  ;;  %v1247_v40 = vpop.f32.mrf.mxu3 }
  0xd4   : > { %v434_v29 = vpop.f32.mrf.mxu0  ;;  %v454_v30 = vpop.f32.mrf.mxu1 }
  0xd5   : > { %v435_v43 = vadd.f32 %v1245_v38, %v434_v29  ;;  %v455_v10 = vadd.f32 %v1245_v38, %v454_v30 }
  0xd7   : > { %v511_v48 = vmax.f32 %v435_v43, 0.0  ;;  %v519_v16 = vmax.f32 %v455_v10, 0.0 }
  0xd9   : > { %v542_v56 = vadd.f32 %v541_v52, %v511_v48 }
  0xdb   : > { %v1240_v36 = vpop.f32.mrf.mxu2  ;;  %v1255_v55 = vpop.f32.mrf.mxu3 }
  0xdc   : > { %v436_v31 = vpop.f32.mrf.mxu0  ;;  %v456_v33 = vpop.f32.mrf.mxu1  ;;  %v475_v45 = vadd.f32 %v1245_v38, %v1240_v36 }
  0xdd   : > { %v437_v46 = vadd.f32 %v1245_v38, %v436_v31  ;;  %v457_v13 = vadd.f32 %v1245_v38, %v456_v33  ;;  %v470_v31 = vadd.f32 %v1245_v38, %v1234_v28 }
  0xde   : > { %v527_v28 = vmax.f32 %v475_v45, 0.0 }
  0xdf   : > { %v512_v53 = vmax.f32 %v437_v46, 0.0  ;;  %v520_v19 = vmax.f32 %v457_v13, 0.0  ;;  %v525_v43 = vmax.f32 %v470_v31, 0.0 }
  0xe1   : > { %v543_v59 = vadd.f32 %v542_v56, %v512_v53  ;;  %v1078_v56 = vmov 0.0  }
  0xe2   : > { %582 = vst [vmem:[%s1279_s22] sm:$0x1] %v1078_v56 }
  0xe3   : > { %v476_v44 = vpop.f32.mrf.mxu2  ;;  %v1261_v8 = vpop.f32.mrf.mxu3 }
  0xe4   : > { %v439_v35 = vpop.f32.mrf.mxu0  ;;  %v459_v37 = vpop.f32.mrf.mxu1  ;;  %v477_v48 = vadd.f32 %v1245_v38, %v476_v44  ;;  %v497_v10 = vadd.f32 %v1245_v38, %v1261_v8 }
  0xe5   : > { %v440_v49 = vadd.f32 %v1245_v38, %v439_v35  ;;  %v460_v17 = vadd.f32 %v1245_v38, %v459_v37 }
  0xe6   : > { %v528_v53 = vmax.f32 %v477_v48, 0.0 }
  0xe7   : > { %v513_v57 = vmax.f32 %v440_v49, 0.0  ;;  %v521_v23 = vmax.f32 %v460_v17, 0.0 }
  0xe9   : > { %v544_v62 = vadd.f32 %v543_v59, %v513_v57 }
  0xeb   : > { %v479_v61 = vpop.f32.mrf.mxu2  ;;  %v499_v26 = vpop.f32.mrf.mxu3 }
  0xec   : > { %v441_v39 = vpop.f32.mrf.mxu0  ;;  %v461_v51 = vpop.f32.mrf.mxu1 }
  0xed   : > { %v442_v54 = vadd.f32 %v1245_v38, %v441_v39  ;;  %v462_v20 = vadd.f32 %v1245_v38, %v461_v51  ;;  %v472_v39 = vadd.f32 %v1245_v38, %v1236_v32  ;;  %v480_v51 = vadd.f32 %v1245_v38, %v479_v61 }
  0xee   : > { %v490_v61 = vadd.f32 %v1245_v38, %v1238_v34  ;;  %v500_v34 = vadd.f32 %v1245_v38, %v499_v26 }
  0xef   : > { %v514_v60 = vmax.f32 %v442_v54, 0.0  ;;  %v522_v27 = vmax.f32 %v462_v20, 0.0  ;;  %v526_v47 = vmax.f32 %v472_v39, 0.0  ;;  %v529_v57 = vmax.f32 %v480_v51, 0.0 }
  0xf0   : > { %v533_v5 = vmax.f32 %v490_v61, 0.0  ;;  %v537_v17 = vmax.f32 %v500_v34, 0.0 }
  0xf1   : > { %v545_v2 = vadd.f32 %v544_v62, %v514_v60 }
  0xf3   : > { %v481_v15 = vpop.f32.mrf.mxu2 }
  0xf4   : > { %v444_v50 = vpop.f32.mrf.mxu0  ;;  %v464_v4 = vpop.f32.mrf.mxu1  ;;  %v482_v32 = vadd.f32 %v1245_v38, %v481_v15 }
  0xf5   : > { %v445_v58 = vadd.f32 %v1245_v38, %v444_v50  ;;  %v465_v24 = vadd.f32 %v1245_v38, %v464_v4  ;;  %v501_v50 = vpop.f32.mrf.mxu3 }
  0xf6   : > { %v530_v59 = vmax.f32 %v482_v32, 0.0  ;;  %v502_v15 = vadd.f32 %v1245_v38, %v501_v50 }
  0xf7   : > { %v515_v63 = vmax.f32 %v445_v58, 0.0  ;;  %v523_v33 = vmax.f32 %v465_v24, 0.0 }
  0xf9   : > { %v546_v6 = vadd.f32 %v545_v2, %v515_v63  ;;  %v492_v2 = vadd.f32 %v1245_v38, %v1247_v40 }
  0xfb   : > { %v484_v37 = vpop.f32.mrf.mxu2 }
  0xfc   : > { %v446_v0 = vpop.f32.mrf.mxu0  ;;  %v466_v22 = vpop.f32.mrf.mxu1  ;;  %v485_v44 = vadd.f32 %v1245_v38, %v484_v37 }
  0xfd   : > { %v447_v3 = vadd.f32 %v1245_v38, %v446_v0  ;;  %v467_v30 = vadd.f32 %v1245_v38, %v466_v22  ;;  %v504_v1 = vpop.f32.mrf.mxu3 }
  0xfe   : > { %v531_v0 = vmax.f32 %v485_v44, 0.0 }
  0xff   : > { %v516_v7 = vmax.f32 %v447_v3, 0.0  ;;  %v524_v42 = vmax.f32 %v467_v30, 0.0 }
 0x101   : > { %v547_v11 = vadd.f32 %v546_v6, %v516_v7  ;;  %v495_v6 = vadd.f32 %v1245_v38, %v1255_v55  ;;  %v505_v55 = vadd.f32 %v1245_v38, %v504_v1 }
 0x103   : > { %v548_v14 = vadd.f32 %v547_v11, %v517_v9  ;;  %v486_v36 = vpop.f32.mrf.mxu2  ;;  %v534_v9 = vmax.f32 %v492_v2, 0.0  ;;  %v539_v22 = vmax.f32 %v505_v55, 0.0 }
 0x104   : > { %v487_v62 = vadd.f32 %v1245_v38, %v486_v36 }
 0x105   : > { %v549_v18 = vadd.f32 %v548_v14, %v518_v12  ;;  %v535_v12 = vmax.f32 %v495_v6, 0.0  ;;  %v536_v14 = vmax.f32 %v497_v10, 0.0 }
 0x106   : > { %v532_v4 = vmax.f32 %v487_v62, 0.0 }
 0x107   : > { %v550_v21 = vadd.f32 %v549_v18, %v519_v16  ;;  %v506_v16 = vpop.f32.mrf.mxu3 }
 0x108   : > { %v507_v8 = vadd.f32 %v1245_v38, %v506_v16 }
 0x109   : > { %v551_v25 = vadd.f32 %v550_v21, %v520_v19  ;;  %v538_v19 = vmax.f32 %v502_v15, 0.0 }
 0x10a   : > { %v540_v24 = vmax.f32 %v507_v8, 0.0 }
 0x10b   : > { %v552_v29 = vadd.f32 %v551_v25, %v521_v23 }
 0x10d   : > { %v553_v35 = vadd.f32 %v552_v29, %v522_v27 }
 0x10f   : > { %v554_v41 = vadd.f32 %v553_v35, %v523_v33  ;;  %v583_v33 = vld [vmem:[%s1279_s22] sm:$0x1] }
 0x111   : > { %v555_v46 = vadd.f32 %v554_v41, %v524_v42 }
 0x113   : > { %v556_v49 = vadd.f32 %v555_v46, %v525_v43 }
 0x115   : > { %v557_v52 = vadd.f32 %v556_v49, %v526_v47 }
 0x117   : > { %v558_v54 = vadd.f32 %v557_v52, %v527_v28 }
 0x119   : > { %v559_v58 = vadd.f32 %v558_v54, %v528_v53 }
 0x11b   : > { %v560_v60 = vadd.f32 %v559_v58, %v529_v57 }
 0x11d   : > { %v561_v63 = vadd.f32 %v560_v60, %v530_v59 }
 0x11f   : > { %v562_v3 = vadd.f32 %v561_v63, %v531_v0 }
 0x121   : > { %v563_v7 = vadd.f32 %v562_v3, %v532_v4 }
 0x123   : > { %v564_v11 = vadd.f32 %v563_v7, %v533_v5 }
 0x125   : > { %v565_v13 = vadd.f32 %v564_v11, %v534_v9 }
 0x127   : > { %v566_v40 = vadd.f32 %v565_v13, %v535_v12 }
 0x129   : > { %v567_v18 = vadd.f32 %v566_v40, %v536_v14 }
 0x12b   : > { %v568_v20 = vadd.f32 %v567_v18, %v537_v17 }
 0x12d   : > { %v569_v21 = vadd.f32 %v568_v20, %v538_v19 }
 0x12f   : > { %v570_v23 = vadd.f32 %v569_v21, %v539_v22 }
 0x131   : > { %v571_v25 = vadd.f32 %v570_v23, %v540_v24 }
 0x133   : > { %v572_v26 = vrot.slane %v571_v25, 4 }
 0x135   : > { %v573_v27 = vadd.f32 %v572_v26, %v571_v25 }
 0x137   : > { %v574_v29 = vrot.slane %v573_v27, 2 }
 0x139   : > { %v575_v30 = vadd.f32 %v574_v29, %v573_v27 }
 0x13b   : > { %v576_v31 = vrot.slane %v575_v30, 1 }
 0x13d   : > { %v577_v35 = vadd.f32 %v576_v31, %v575_v30 }
 0x13f   : > { %v584_v37 = vadd.f32 %v583_v33, %v577_v35 }
 0x141   : > { %585 = vst [vmem:[%s1279_s22] sm:$0x1] %v584_v37 }
 0x148   : > { %v589_v38 = vld [vmem:[%s1279_s22] sm:$0x1] }
 0x149   : > { %v590_v39 = vmul.f32 0.00390625, %v589_v38 }
 0x14b   : > { %591 = vst [vmem:[%s1279_s22] sm:$0x1] %v590_v39 }
 0x14c   : > { %1014 = shalt.err (!%p1011_p0)
}
 0x14d   : > { %856 = dma.vmem_to_hbm [thread:$0]  (%p1181_p5), %s604_s7, 16, %s606_s10, %s593_s24  }
 0x14e PF: > { %s617_s6 = sand.u32 1, %s1053_s12   ;;  %p867_p3 = pnand %p696_p11, %p1148_p6 }
 0x14f   : > { %s618_s11 = scalar_lea.sflag [#allocation4], %s617_s6 }
 0x150   : > { %p868_p7 = pneg %p867_p3 }
 0x152   : > { %1048 = dma.done.wait (%p868_p7), %s618_s11, 16  }
 0x153   : > { %1050 = vsyncadd (%p868_p7), %s618_s11, 4294967280  ;;  %s20_s17 = sadd.s32 1, %s1073_s17   ;;  %s1354_s12 = smov %s1057_s13 }
 0x154   : > { %p17_p9 = scmp.ge.s32.totalorder %s20_s17, 4   ;;  %s1355_s13 = smov %s1061_s14 }
 0x155   : > { %s1356_s14 = smov %s1190_s18  ;;  %s1357_s15 = smov %s1069_s16 }
 0x156   : > { %s1358_s16 = smov %s1360_s5  ;;  %19 = sbr.rel (!%p17_p9) target bundleno = 9 (0x9), region = 89 }
 0x15b   :  { %623 = vsyncpa [#allocation3], 1 }
 0x15c   :  { %625 = vsyncpa [#allocation3 + $0x1], 1 }
 0x15d   :  { %626 = vsyncpa [#allocation6], 1 }
 0x15e   :  { %627 = vsyncpa [#allocation4], 1 }
 0x15f   :  { %629 = vsyncpa [#allocation4 + $0x1], 1 }

</bundles_post_ra>
